<compile_context>
chip_gen: v7x
topology: tpu7x:2x2x1
jax: 0.10.0
libtpu: 0.0.40
codegen_flags: <defaults>
</compile_context>

<pallas_src>
import numpy as np
import jax
import jax.numpy as jnp
from jax.experimental import pallas as pl
from jax.experimental.pallas import tpu as pltpu


# ----------------------------- Pallas kernel ------------------------------------
def _decoder_kernel(a_ref, w_ref, w2blk_ref, b2_sm, out_ref):
    # a_ref     : (B*16, K1)     bf16  A[(b,co), i*16+c] = zb[b,i]*(co==c), zb=[z,1]
    # w_ref     : (1, K1, TLE)   bf16  fused (fc o deconv1) weight tile, 2-col halo + 0-pad
    # w2blk_ref : (3B, 16B)      f32   block-diag deconv2 taps: [(k,b), (b,ci)] = w2[ci,0,k]
    # b2_sm     : (1,)           f32   deconv2 bias (SMEM scalar)
    # out_ref   : (B, 2, TL)     f32   even/odd phases of upsample+deconv2 output
    B, _, TL = out_ref.shape

    # fused fc+deconv1 for all batch rows at once: bf16 x bf16 -> f32 on the MXU.
    h1 = jnp.dot(a_ref[...], w_ref[0], preferred_element_type=jnp.float32)  # (B*16, TLE)
    h1 = jnp.maximum(h1, 0.0)                                               # ReLU
    # columns outside [0,L1) were prepacked as zero weight/bias columns, so h1 is
    # exactly 0 there == the zero padding deconv2 must see at the edges.

    # all batches' deconv2 tap rows in ONE MXU call (block-diagonal weight):
    v = jnp.dot(w2blk_ref[...], h1, preferred_element_type=jnp.float32)     # (3B, TLE)
    v0, v1, v2 = v[0:B], v[B:2 * B], v[2 * B:3 * B]                         # (B, TLE) each

    # upsample(x2 nearest) + ConvTranspose1d(16,1,3,s=1,p=1) folded analytically
    # (ext column j <-> global l = t*TL + j - 2):
    #   out[2m]   = b2 + v0[m]   + v1[m] + v2[m-1]
    #   out[2m+1] = b2 + v0[m+1] + v1[m] + v2[m]
    b2 = b2_sm[0]
    even = v0[:, 2:2 + TL] + v1[:, 2:2 + TL] + v2[:, 1:1 + TL] + b2         # (B, TL)
    odd = v0[:, 3:3 + TL] + v1[:, 2:2 + TL] + v2[:, 2:2 + TL] + b2          # (B, TL)

    # sigmoid via EUP exp + approximate reciprocal; two lane-dense stores.
    out_ref[:, 0, :] = pl.reciprocal(1.0 + jnp.exp(-even), approx=True)
    out_ref[:, 1, :] = pl.reciprocal(1.0 + jnp.exp(-odd), approx=True)


# ----------------------------- one-time prepack ----------------------------------
def prepack_decoder_params(params, *, tile_l=2048):
    """One-time parameter re-layout + fc/deconv1 folding.  Call once per checkpoint,
    NOT per forward call.  tile_l must be a multiple of 128; large tiles (2048-4096)
    minimise per-grid-step overhead, but keep >=2 tiles for v7x's two TensorCores."""
    assert tile_l % 128 == 0, "tile_l must be a multiple of 128 (lane-aligned output)"
    fc_w, fc_b, w1, b1, w2, b2 = params
    c1, c2, _ = w1.shape                          # 32, 16, 3
    latent = fc_w.shape[1]
    L1 = fc_w.shape[0] // c1                      # output_length * 5 // 2
    hp = jax.lax.Precision.HIGHEST

    # fc weight viewed as (latent, 32, L1):  h0[c,l] = sum_i z[i]*W0[i,c,l] + b0[c,l]
    W0 = jnp.transpose(fc_w.reshape(c1, L1, latent), (2, 0, 1)).astype(jnp.float32)
    b0 = fc_b.reshape(c1, L1).astype(jnp.float32)

    def sl(x):   # x[..., l+1], zero at the right edge
        return jnp.concatenate([x[..., 1:], jnp.zeros_like(x[..., :1])], axis=-1)

    def sr(x):   # x[..., l-1], zero at the left edge
        return jnp.concatenate([jnp.zeros_like(x[..., :1]), x[..., :-1]], axis=-1)

    # fold deconv1 (ConvTranspose1d(32,16,3,s=1,p=1)):
    #   h1[co,l] = relu( sum_i z[i]*Wf[i,co,l] + bf[co,l] )
    Wf = (jnp.einsum('icl,co->iol', sl(W0), w1[:, :, 0], precision=hp)
          + jnp.einsum('icl,co->iol', W0, w1[:, :, 1], precision=hp)
          + jnp.einsum('icl,co->iol', sr(W0), w1[:, :, 2], precision=hp))   # (latent,16,L1)
    bf = (jnp.einsum('cl,co->ol', sl(b0), w1[:, :, 0], precision=hp)
          + jnp.einsum('cl,co->ol', b0, w1[:, :, 1], precision=hp)
          + jnp.einsum('cl,co->ol', sr(b0), w1[:, :, 2], precision=hp)) + b1[:, None]

    WK = jnp.concatenate([Wf.reshape(latent * c2, L1), bf], axis=0)   # (K1, L1)

    # tile L1; build overlapped tiles (2-col halo) with lane-aligned stored width.
    n_t = -(-L1 // tile_l)
    L1p = n_t * tile_l
    tle = ((tile_l + 4 + 127) // 128) * 128                # 128-lane-aligned tile width
    pad_right = (n_t - 1) * tile_l + tle - 2 - L1          # zero cols: halo + alignment
    WKp = jnp.pad(WK, ((0, 0), (2, pad_right)))
    idx = jnp.arange(n_t)[:, None] * tile_l + jnp.arange(tle)[None, :]
    W_ov = jnp.transpose(WKp[:, idx], (1, 0, 2)).astype(jnp.bfloat16)  # (n_t, K1, tle)

    w2t = jnp.transpose(w2[:, 0, :], (1, 0)).astype(jnp.float32)       # (3, 16)
    b2s = b2.reshape(1).astype(jnp.float32)
    meta = dict(latent=latent, c2=c2, L1=L1, L1p=L1p, tile_l=tile_l, tle=tle, n_t=n_t)
    return W_ov, w2t, b2s, meta


# ----------------------------- JAX wrapper ---------------------------------------
def classical_decoder_forward(z, packed):
    W_ov, w2t, b2s, meta = packed
    latent, c2 = meta['latent'], meta['c2']
    L1, L1p, TL, tle, n_t = meta['L1'], meta['L1p'], meta['tile_l'], meta['tle'], meta['n_t']
    K1 = c2 * (latent + 1)
    B = z.shape[0]
    # NOTE: the weight stream (dominant HBM traffic) is read ONCE per call regardless
    # of B -- batching more latent vectors per call (B up to 16) is near-free.

    # A[(b,co), i*16+c] = zb[b,i]*(co==c) with zb=[z,1]; built in bf16 (MXU-native).
    zb = jnp.concatenate([z.astype(jnp.float32), jnp.ones((B, 1), jnp.float32)], axis=1)
    eye = jnp.eye(c2, dtype=jnp.float32)
    A = jnp.einsum('bi,xc->bxic', zb, eye).reshape(B * c2, K1).astype(jnp.bfloat16)

    # block-diagonal deconv2 taps: W2blk[k*B+b, b*16+ci] = w2[ci, 0, k]
    W2blk = (jnp.eye(B, dtype=jnp.float32)[None, :, :, None]
             * w2t[:, None, None, :]).reshape(3 * B, c2 * B)

    flops = 2 * (B * c2) * K1 * n_t * tle + 2 * (3 * B) * (c2 * B) * n_t * tle
    bytes_accessed = (K1 * n_t * tle * 2        # bf16 weight stream
                      + B * c2 * K1 * 2         # A
                      + 3 * B * c2 * B * 4      # W2blk
                      + B * 2 * L1p * 4)        # output
    transcendentals = 2 * B * L1p               # one exp per output element

    out_eo = pl.pallas_call(
        _decoder_kernel,
        out_shape=jax.ShapeDtypeStruct((B, 2, L1p), jnp.float32),
        grid=(n_t,),
        in_specs=[
            pl.BlockSpec((B * c2, K1), lambda t: (0, 0)),        # A      (resident)
            pl.BlockSpec((1, K1, tle), lambda t: (t, 0, 0)),     # W_ov   (streamed once)
            pl.BlockSpec((3 * B, c2 * B), lambda t: (0, 0)),     # W2blk  (resident)
            pl.BlockSpec(memory_space=pltpu.MemorySpace.SMEM),   # b2
        ],
        out_specs=pl.BlockSpec((B, 2, TL), lambda t: (0, 0, t)),
        compiler_params=pltpu.CompilerParams(
            dimension_semantics=("parallel",),                   # tiles independent
        ),
        cost_estimate=pl.CostEstimate(flops=int(flops),
                                      transcendentals=int(transcendentals),
                                      bytes_accessed=int(bytes_accessed)),
    )(A, W_ov, W2blk, b2s)

    # interleave even/odd phases -> NCW (B, 1, 2*L1), dropping the L1 padding.
    out = jnp.transpose(out_eo, (0, 2, 1)).reshape(B, 1, 2 * L1p)
    return out[:, :, :2 * L1]


# ----------------------------- numpy reference -----------------------------------
def _conv_transpose1d_ref(x, w, b, padding=1):
    # x: (B, Cin, L), w: (Cin, Cout, K), stride=1  (PyTorch ConvTranspose1d semantics)
    B, Cin, L = x.shape
    _, Cout, K = w.shape
    full = np.zeros((B, Cout, L + K - 1), dtype=np.float32)
    for k in range(K):
        full[:, :, k:k + L] += np.einsum('bil,io->bol', x, w[:, :, k])
    return full[:, :, padding:L + K - 1 - padding] + b.reshape(1, -1, 1)


def _reference_forward(z, params, L1):
    fc_w, fc_b, w1, b1, w2, b2 = [np.asarray(p, np.float32) for p in params]
    z = np.asarray(z, np.float32)
    h = z @ fc_w.T + fc_b                        # (B, 32*L1)
    h = h.reshape(z.shape[0], 32, L1)            # view(B, 32, L1)
    h = np.maximum(_conv_transpose1d_ref(h, w1, b1), 0.0)
    h = np.repeat(h, 2, axis=2)                  # nearest upsample to 2*L1
    y = _conv_transpose1d_ref(h, w2, b2)
    return 1.0 / (1.0 + np.exp(-y))              # (B, 1, 2*L1)


# ----------------------------- main -----------------------------------------------
if __name__ == "__main__":
    # Small shapes consistent with the module (original: output_length=7098, latent=10,
    # where the hard-coded Upsample(size=35490) is exactly a 2x nearest upsample).
    B, latent, output_length = 2, 10, 256
    L1 = output_length * 5 // 2                  # 640   (real module: 17745)
    L2 = 2 * L1                                  # 1280  (real module: 35490)

    key = jax.random.PRNGKey(0)
    k = jax.random.split(key, 7)
    fc_w = 0.3 * jax.random.normal(k[0], (32 * L1, latent), jnp.float32)   # Linear.weight (out,in)
    fc_b = 0.1 * jax.random.normal(k[1], (32 * L1,), jnp.float32)
    w1 = 0.15 * jax.random.normal(k[2], (32, 16, 3), jnp.float32)          # ConvTranspose1d(32,16,3)
    b1 = 0.05 * jax.random.normal(k[3], (16,), jnp.float32)
    w2 = 0.2 * jax.random.normal(k[4], (16, 1, 3), jnp.float32)            # ConvTranspose1d(16,1,3)
    b2 = 0.05 * jax.random.normal(k[5], (1,), jnp.float32)
    z = jax.random.normal(k[6], (B, latent), jnp.float32)

    params = (fc_w, fc_b, w1, b1, w2, b2)
    # toy scale: tile_l=384 -> n_t=2 tiles (>=2 tiles for v7x megacore; default 2048
    # at the real L1=17745 gives 9 tiles).
    packed = prepack_decoder_params(params, tile_l=384)   # once per checkpoint
    out = jax.block_until_ready(classical_decoder_forward(z, packed))
    assert out.shape == (B, 1, L2), out.shape

    ref = _reference_forward(z, params, L1)
    np.testing.assert_allclose(np.asarray(out), ref, rtol=1e-2, atol=1e-2)
    print("KERNEL_OK")
</pallas_src>

<mosaic_0001>
module attributes {stable_mosaic.version = 11 : i64} {
  func.func @_decoder_kernel(%arg0: i32, %arg1: memref<32x176xbf16, #tpu.memory_space<vmem>>, %arg2: memref<1x176x512xbf16, #tpu.memory_space<vmem>>, %arg3: memref<6x32xf32, #tpu.memory_space<vmem>>, %arg4: memref<1xf32, #tpu.memory_space<smem>>, %arg5: memref<2x2x384xf32, #tpu.memory_space<vmem>>) attributes {dimension_semantics = [#tpu.dimension_semantics<parallel>], iteration_bounds = array<i64: 2>, scalar_prefetch = 0 : i64, scratch_operands = 0 : i64, tpu.core_type = #tpu.core_type<tc>, window_params = [{pipeline_mode = #tpu.pipeline_mode<synchronous>, transform_indices = @transform_0, window_bounds = array<i64: 32, 176>}, {transform_indices = @transform_1, window_bounds = array<i64: 1, 176, 512>}, {pipeline_mode = #tpu.pipeline_mode<synchronous>, transform_indices = @transform_2, window_bounds = array<i64: 6, 32>}, {transform_indices = @transform_3, window_bounds = array<i64: 1>}, {transform_indices = @transform_4, window_bounds = array<i64: 2, 2, 384>}]} {
    %c0 = arith.constant 0 : index
    %c0_0 = arith.constant 0 : index
    %0 = vector.load %arg1[%c0, %c0_0] : memref<32x176xbf16, #tpu.memory_space<vmem>>, vector<32x176xbf16>
    %c0_1 = arith.constant 0 : index
    %c0_2 = arith.constant 0 : index
    %c0_3 = arith.constant 0 : index
    %1 = vector.load %arg2[%c0_1, %c0_2, %c0_3] : memref<1x176x512xbf16, #tpu.memory_space<vmem>>, vector<1x176x512xbf16>
    %2 = vector.shape_cast %1 : vector<1x176x512xbf16> to vector<176x512xbf16>
    %cst = arith.constant dense<0.000000e+00> : vector<32x512xf32>
    %3 = tpu.matmul %0, %2, %cst {dimension_numbers = #tpu.dot_dimension_numbers<[1], [0], [0], [1], [0, 0, 1, 1], [], []>} : vector<32x176xbf16>, vector<176x512xbf16>, vector<32x512xf32> -> vector<32x512xf32>
    %cst_4 = arith.constant 0.000000e+00 : f32
    %4 = vector.broadcast %cst_4 : f32 to vector<32x512xf32>
    %5 = arith.maximumf %3, %4 : vector<32x512xf32>
    %c0_5 = arith.constant 0 : index
    %c0_6 = arith.constant 0 : index
    %6 = vector.load %arg3[%c0_5, %c0_6] : memref<6x32xf32, #tpu.memory_space<vmem>>, vector<6x32xf32>
    %cst_7 = arith.constant dense<0.000000e+00> : vector<6x512xf32>
    %7 = tpu.matmul %6, %5, %cst_7 {dimension_numbers = #tpu.dot_dimension_numbers<[1], [0], [0], [1], [0, 0, 1, 1], [], []>} : vector<6x32xf32>, vector<32x512xf32>, vector<6x512xf32> -> vector<6x512xf32>
    %8 = vector.extract_strided_slice %7 {offsets = [0, 0], sizes = [2, 512], strides = [1, 1]} : vector<6x512xf32> to vector<2x512xf32>
    %9 = vector.extract_strided_slice %7 {offsets = [2, 0], sizes = [2, 512], strides = [1, 1]} : vector<6x512xf32> to vector<2x512xf32>
    %10 = vector.extract_strided_slice %7 {offsets = [4, 0], sizes = [2, 512], strides = [1, 1]} : vector<6x512xf32> to vector<2x512xf32>
    %c0_8 = arith.constant 0 : index
    %11 = memref.load %arg4[%c0_8] : memref<1xf32, #tpu.memory_space<smem>>
    %12 = vector.extract_strided_slice %8 {offsets = [0, 2], sizes = [2, 384], strides = [1, 1]} : vector<2x512xf32> to vector<2x384xf32>
    %13 = vector.extract_strided_slice %9 {offsets = [0, 2], sizes = [2, 384], strides = [1, 1]} : vector<2x512xf32> to vector<2x384xf32>
    %14 = arith.addf %12, %13 : vector<2x384xf32>
    %15 = vector.extract_strided_slice %10 {offsets = [0, 1], sizes = [2, 384], strides = [1, 1]} : vector<2x512xf32> to vector<2x384xf32>
    %16 = arith.addf %14, %15 : vector<2x384xf32>
    %17 = vector.broadcast %11 : f32 to vector<2x384xf32>
    %18 = arith.addf %16, %17 : vector<2x384xf32>
    %19 = vector.extract_strided_slice %8 {offsets = [0, 3], sizes = [2, 384], strides = [1, 1]} : vector<2x512xf32> to vector<2x384xf32>
    %20 = vector.extract_strided_slice %9 {offsets = [0, 2], sizes = [2, 384], strides = [1, 1]} : vector<2x512xf32> to vector<2x384xf32>
    %21 = arith.addf %19, %20 : vector<2x384xf32>
    %22 = vector.extract_strided_slice %10 {offsets = [0, 2], sizes = [2, 384], strides = [1, 1]} : vector<2x512xf32> to vector<2x384xf32>
    %23 = arith.addf %21, %22 : vector<2x384xf32>
    %24 = vector.broadcast %11 : f32 to vector<2x384xf32>
    %25 = arith.addf %23, %24 : vector<2x384xf32>
    %cst_9 = arith.constant 0.000000e+00 : f32
    %26 = vector.broadcast %cst_9 : f32 to vector<2x384xf32>
    %27 = arith.subf %26, %18 : vector<2x384xf32>
    %28 = math.exp %27 : vector<2x384xf32>
    %cst_10 = arith.constant 1.000000e+00 : f32
    %29 = vector.broadcast %cst_10 : f32 to vector<2x384xf32>
    %30 = arith.addf %29, %28 : vector<2x384xf32>
    %31 = tpu.reciprocal %30 {approx = true} : vector<2x384xf32> -> vector<2x384xf32>
    %c0_11 = arith.constant 0 : index
    %c0_12 = arith.constant 0 : index
    %c0_13 = arith.constant 0 : index
    %32 = vector.load %arg5[%c0_11, %c0_12, %c0_13] : memref<2x2x384xf32, #tpu.memory_space<vmem>>, vector<2x1x384xf32>
    %33 = vector.shape_cast %32 : vector<2x1x384xf32> to vector<2x384xf32>
    %34 = vector.shape_cast %31 : vector<2x384xf32> to vector<2x1x384xf32>
    tpu.vector_store %arg5[%c0_11, %c0_12, %c0_13], %34 {strides = array<i32>} : memref<2x2x384xf32, #tpu.memory_space<vmem>>, vector<2x1x384xf32>,
    %cst_14 = arith.constant 0.000000e+00 : f32
    %35 = vector.broadcast %cst_14 : f32 to vector<2x384xf32>
    %36 = arith.subf %35, %25 : vector<2x384xf32>
    %37 = math.exp %36 : vector<2x384xf32>
    %cst_15 = arith.constant 1.000000e+00 : f32
    %38 = vector.broadcast %cst_15 : f32 to vector<2x384xf32>
    %39 = arith.addf %38, %37 : vector<2x384xf32>
    %40 = tpu.reciprocal %39 {approx = true} : vector<2x384xf32> -> vector<2x384xf32>
    %c0_16 = arith.constant 0 : index
    %c1 = arith.constant 1 : index
    %c0_17 = arith.constant 0 : index
    %41 = vector.load %arg5[%c0_16, %c1, %c0_17] : memref<2x2x384xf32, #tpu.memory_space<vmem>>, vector<2x1x384xf32>
    %42 = vector.shape_cast %41 : vector<2x1x384xf32> to vector<2x384xf32>
    %43 = vector.shape_cast %40 : vector<2x384xf32> to vector<2x1x384xf32>
    tpu.vector_store %arg5[%c0_16, %c1, %c0_17], %43 {strides = array<i32>} : memref<2x2x384xf32, #tpu.memory_space<vmem>>, vector<2x1x384xf32>,
    return
  }
  func.func @transform_0(%arg0: i32) -> (i32, i32) {
    %c0_i32 = arith.constant 0 : i32
    %c0_i32_0 = arith.constant 0 : i32
    %c0_i32_1 = arith.constant 0 : i32
    return %c0_i32, %c0_i32_0 : i32, i32
  }
  func.func @transform_1(%arg0: i32) -> (i32, i32, i32) {
    %c0_i32 = arith.constant 0 : i32
    %c0_i32_0 = arith.constant 0 : i32
    %c0_i32_1 = arith.constant 0 : i32
    return %arg0, %c0_i32, %c0_i32_0 : i32, i32, i32
  }
  func.func @transform_2(%arg0: i32) -> (i32, i32) {
    %c0_i32 = arith.constant 0 : i32
    %c0_i32_0 = arith.constant 0 : i32
    %c0_i32_1 = arith.constant 0 : i32
    return %c0_i32, %c0_i32_0 : i32, i32
  }
  func.func @transform_3(%arg0: i32) -> i32 {
    %c0_i32 = arith.constant 0 : i32
    %c0_i32_0 = arith.constant 0 : i32
    return %c0_i32 : i32
  }
  func.func @transform_4(%arg0: i32) -> (i32, i32, i32) {
    %c0_i32 = arith.constant 0 : i32
    %c0_i32_0 = arith.constant 0 : i32
    %c0_i32_1 = arith.constant 0 : i32
    return %c0_i32, %c0_i32_0, %arg0 : i32, i32, i32
  }
}

</mosaic_0001>

<bundles_post_ra>
// kernel: tpu_custom_call.1
= control target key start
LH: loop header
LB: loop body
LE: loop exit
PB: predicated region body
PF: predicated region fallthrough
CT: control target
= control target key end

     0   :  { %s1820_s0 = inlined_call_operand.hbm [shape: bf16[32,176], index: 0, kind: input, shape index: {}]   ;;  %s1821_s1 = inlined_call_operand.hbm [shape: bf16[2,176,512], index: 1, kind: input, shape index: {}]   ;;  %s1822_s2 = inlined_call_operand.vmem [shape: f32[6,32], index: 2, kind: input, shape index: {}]   ;;  %s1823_s3 = inlined_call_operand.<no memory space> [shape: f32[1], index: 3, kind: input, shape index: {}]   ;;  %s1824_s4 = inlined_call_operand.hbm [shape: f32[2,2,768], index: 4, kind: output, shape index: {}]  }
   0x1   :  { %9 = sst [smem:[#allocation2]] %s1823_s3 }
   0x2   :  { %10 = vsyncpa [#allocation4], 0 }
   0x3   :  { %11 = vsyncpa [#allocation7], 0 }
   0x4   :  { %13 = vsyncpa [#allocation7 + $0x1], 0 }
   0x5   :  { %14 = vsyncpa [#allocation5], 0 }
   0x6   :  { %16 = vsyncpa [#allocation5 + $0x1], 0  ;;  %s1547_s17 = smov 0   ;;  %s1549_s18 = smov 0  }
   0x7   :  { %s1551_s19 = smov 0   ;;  %s1553_s20 = smov 0  }
   0x8 LB: > { %s1568_s3 = sadd.s32 4294967295, %s1502_s20   ;;  %s1113_s21 = sadd.s32 4294967294, %s1502_s20   ;;  %s1502_s20 = sphi %s1553_s20, %s1846_s20   ;;  %s1498_s19 = sphi %s1551_s19, %s1845_s19   ;;  %s1494_s18 = sphi %s1549_s18, %s1844_s18   ;;  %s1490_s17 = sphi %s1547_s17, %s1843_s17  }
   0x9   : > { %p63_p0 = scmp.ne.s32.totalorder %s1494_s18, %s1490_s17  ;;  %p1825_p1 = scmp.eq.s32.totalorder %s1568_s3, 0 }
   0xa   : > { %p135_p3 = scmp.eq.s32.totalorder %s1113_s21, 1  ;;  %p1114_p5 = scmp.ge.s32.totalorder %s1502_s20, 1 }
   0xb   : > { %p1577_p4 = por %p1825_p1, %p63_p0  ;;  %p142_p7 = scmp.lt.s32.totalorder %s1502_s20, 3 }
   0xc   : > { %p1582_p6 = por %p135_p3, %p63_p0  ;;  %s1504_s25 = smov [#allocation3]  }
   0xd   : > { %s1828_s22 = scalar_select %p1577_p4, 1, 0 }
   0xe   : > { %s1829_s23 = scalar_select %p1582_p6, 1, 0 }
   0xf   : > { %p1587_p8 = pnand %p1114_p5, %p142_p7  ;;  %s154_s26 = sshll.u32 %s1504_s25, 4  ;;  %s1591_s26 = int_to_ptr.vmem [resolvable:$true] %s154_s26 }
  0x10   : > { %s1603_s28 = sadd.s32 1, %s1502_s20   ;;  %s50_s29 = sadd.s32 1, %s1498_s19 }
  0x11   : > { %s1830_s24 = scalar_select %p1587_p8, 1, 0 }
  0x12   : > { %p1209_p9 = pneg %p1587_p8  ;;  %s47_s30 = ssub.s32 %s1502_s20, %s1603_s28 }
  0x13   : > { %s1374_s7 = scalar_lea.hbm %s1820_s0, 512 }
  0x14   : > { %p1598_p11 = pnand %p1209_p9, %p1825_p1  ;;  %p1375_p12 = scmp.ne.s32.totalorder %s1820_s0, %s1374_s7 }
  0x15   : > { %p1381_p5 = scmp.lt.u32.totalorder %s1374_s7, %s1820_s0 }
  0x16   : > { %p1376_p13 = pneg %p1598_p11 }
  0x18   : > { %p1377_p0 = pnand %p1376_p13, %p1375_p12 }
  0x1a   : > { %p1378_p3 = pneg %p1377_p0 }
  0x1c   : > { %p1383_p7 = pnand %p1381_p5, %p1378_p3 }
  0x1e   : > { %1386 = shalt.err (!%p1383_p7)
}
  0x1f   : > { %s1387_s12 = scalar_lea.vmem %s1591_s26, 512  ;;  %p1395_p2 = scmp.lt.s32.totalorder %s1591_s26, %s1591_s26 }
  0x20   : > { %p1388_p9 = scmp.ne.s32.totalorder %s1591_s26, %s1387_s12  ;;  %p1396_p6 = scmp.lt.s32.totalorder %s1387_s12, %s1387_s12 }
  0x22   : > { %p1390_p10 = pnand %p1388_p9, %p1376_p13  ;;  %p1397_p4 = por %p1396_p6, %p1395_p2 }
  0x24   : > { %p1391_p1 = pneg %p1390_p10 }
  0x26   : > { %p1398_p8 = pnand %p1397_p4, %p1391_p1 }
  0x28   : > { %1401 = shalt.err (!%p1398_p8)
}
  0x29   : > { %s1505_s13 = smov 128   ;;  %s1506_s14 = smov 8  }
  0x2a   : > { %1212 = dma.hbm_to_vmem [thread:$0]  (!%p1598_p11), %s1820_s0, 512, %s1591_s26, [#allocation4], %s1505_s13, %s1505_s13, %s1506_s14  }
  0x2b   : > { %p48_p2 = scmp.eq.s32.totalorder %s47_s30, 0  ;;  %p57_p1 = scmp.ne.s32.totalorder %s1498_s19, %s1494_s18 }
  0x2c   : > { %p58_p4 = scmp.eq.s32.totalorder %s1502_s20, 0  ;;  %p1222_p6 = scmp.lt.s32.totalorder %s1502_s20, 2 }
  0x2d   : > { %s1634_s21 = scalar_select %p48_p2, %s1498_s19, %s50_s29  }
  0x2e   : > { %p59_p8 = por %p58_p4, %p57_p1  ;;  %p1832_p10 = scmp.eq.s32.totalorder %s1568_s3, 1 }
  0x2f   : > { %s174_s5 = sand.u32 1, %s1498_s19   ;;  %s1198_s6 = smul.u32 5632, %s1502_s20 }
  0x30   : > { %p1638_p12 = por %p1832_p10, %p57_p1  ;;  %s1197_s7 = smul.u32 352, %s174_s5 }
  0x31   : > { %s1647_s9 = scalar_lea.hbm %s1821_s1, %s1198_s6  ;;  %p1649_p11 = pnand %p1222_p6, %p59_p8 }
  0x32   : > { %s178_s29 = scalar_lea.vmem [#allocation6], %s1197_s7  ;;  %s1655_s10 = scalar_lea.sflag [#allocation7], %s174_s5 }
  0x33   : > { %s185_s30 = sshll.u32 %s178_s29, 4  ;;  %s1402_s11 = scalar_lea.hbm %s1647_s9, 5632  ;;  %s1653_s30 = int_to_ptr.vmem [resolvable:$true] %s185_s30 }
  0x34   : > { %p1403_p13 = scmp.ne.s32.totalorder %s1647_s9, %s1402_s11  ;;  %p1404_p0 = pneg %p1649_p11 }
  0x35   : > { %s1407_s14 = scalar_lea.hbm %s1821_s1, 11264  ;;  %p1408_p7 = scmp.lt.u32.totalorder %s1647_s9, %s1821_s1 }
  0x36   : > { %p1405_p3 = pnand %p1404_p0, %p1403_p13  ;;  %p1409_p9 = scmp.lt.u32.totalorder %s1407_s14, %s1402_s11 }
  0x37   : > { %p1411_p1 = scmp.lt.u32.totalorder %s1402_s11, %s1647_s9 }
  0x38   : > { %p1406_p5 = pneg %p1405_p3  ;;  %p1410_p2 = por %p1409_p9, %p1408_p7 }
  0x3a   : > { %p1412_p4 = por %p1411_p1, %p1410_p2 }
  0x3c   : > { %p1413_p6 = pnand %p1412_p4, %p1406_p5 }
  0x3e   : > { %1416 = shalt.err (!%p1413_p6)
}
  0x3f   : > { %s1417_s5 = scalar_lea.vmem %s1653_s30, 5632  ;;  %s1507_s6 = smov [#allocation6]  }
  0x40   : > { %p1418_p8 = scmp.ne.s32.totalorder %s1653_s30, %s1417_s5  ;;  %s1422_s7 = sshll.u32 %s1507_s6, 4  ;;  %s1423_s7 = int_to_ptr.vmem [resolvable:$false] %s1422_s7 }
  0x41   : > { %s1424_s27 = scalar_lea.vmem %s1423_s7, 11264  ;;  %p1425_p3 = scmp.lt.s32.totalorder %s1653_s30, %s1423_s7 }
  0x42   : > { %p1420_p10 = pnand %p1418_p8, %p1404_p0  ;;  %p1426_p7 = scmp.lt.s32.totalorder %s1424_s27, %s1417_s5 }
  0x44   : > { %p1421_p13 = pneg %p1420_p10  ;;  %p1427_p9 = por %p1426_p7, %p1425_p3 }
  0x46   : > { %p1428_p2 = pnand %p1427_p9, %p1421_p13 }
  0x48   : > { %1431 = shalt.err (!%p1428_p2)
}
  0x49   : > { %s1508_s8 = smov 256   ;;  %s1509_s29 = smov 16  }
  0x4a   : > { %1216 = dma.hbm_to_vmem [thread:$0]  (!%p1649_p11), %s1647_s9, 5632, %s1653_s30, %s1655_s10, %s1508_s8, %s1508_s8, %s1509_s29  }
  0x4b   : > { %p1835_p0 = scmp.ne.s32.totalorder %s1830_s24, 0 }
  0x4c   : > { %p1836_p5 = scmp.eq.s32.totalorder (!%p1835_p0), %s1568_s3, 0 }
  0x4d   : > { %197 = sbr.rel (%p1835_p0) target bundleno = 887 (0x377), region = 36 }
  0x54   : > { %1477 = dma.done.wait (%p1836_p5), [#allocation4], 512   ;;  %p1837_p1 = pmov %p1836_p5 }
  0x55   : > { %s1690_s11 = sand.u32 1, %s1494_s18   ;;  %p1838_p11 = scmp.ne.s32.totalorder %s1828_s22, 0 }
  0x56   : > { %1479 = vsyncadd (%p1837_p1), [#allocation4], 4294966784  ;;  %s1199_s12 = smul.u32 352, %s1690_s11  ;;  %s204_s13 = scalar_lea.sflag [#allocation7], %s1690_s11 }
  0x58   : > { %s1694_s14 = scalar_lea.vmem [#allocation6], %s1199_s12 }
  0x59   : > { %1481 = dma.done.wait (%p1838_p11), %s204_s13, 5632  }
  0x5a   : > { %1483 = vsyncadd (%p1838_p11), %s204_s13, 4294961664  ;;  %v1270_v0 = vld [vmem:[%s1694_s14 + $0x4] ss:$16 sps:$4 sm:$0xff]   ;;  %v1272_v1 = vld [vmem:[%s1694_s14 + $0xc] ss:$16 sps:$4 sm:$0xff]   ;;  %vm520_vm0 = vcmask 392192  }
  0x5b   : > { %527 = vmatprep.subr.bf16.mxu0 %v1270_v0  ;;  %v1274_v2 = vld [vmem:[%s1694_s14] ss:$16 sps:$4 sm:$0xff]   ;;  %v1275_v3 = vld [vmem:[%s1694_s14 + $0x8] ss:$16 sps:$4 sm:$0xff]   ;;  %580 = vmatprep.subr.bf16.mxu1 %v1272_v1  ;;  %v1276_v4 = vld [vmem:[%s1694_s14 + $0x24] ss:$16 sps:$4 sm:$0xff]  }
  0x5c   : > { %528 = vmatpush1.bf16.msra.mxu0 %v1274_v2  ;;  %581 = vmatpush1.bf16.msra.mxu1 %v1275_v3  ;;  %v1278_v5 = vld [vmem:[%s1694_s14 + $0x2c] ss:$16 sps:$4 sm:$0xff]   ;;  %v1280_v6 = vld [vmem:[%s1694_s14 + $0x20] ss:$16 sps:$4 sm:$0xff]   ;;  %v1281_v7 = vld [vmem:[%s1694_s14 + $0x28] ss:$16 sps:$4 sm:$0xff]  }
  0x5d   : > { %529 = vmatprep.subr.bf16.mxu0 %v1276_v4  ;;  %582 = vmatprep.subr.bf16.mxu1 %v1278_v5  ;;  %v1282_v8 = vld [vmem:[%s1694_s14 + $0x44] ss:$16 sps:$4 sm:$0xff]   ;;  %v1284_v9 = vld [vmem:[%s1694_s14 + $0x4c] ss:$16 sps:$4 sm:$0xff]   ;;  %v1286_v10 = vld [vmem:[%s1694_s14 + $0x40] ss:$16 sps:$4 sm:$0xff]  }
  0x5e   : > { %v1287_v11 = vld [vmem:[%s1694_s14 + $0x48] ss:$16 sps:$4 sm:$0xff]   ;;  %v1288_v12 = vld [vmem:[%s1694_s14 + $0x64] ss:$16 sps:$4 sm:$0xff]   ;;  %v1290_v13 = vld [vmem:[%s1694_s14 + $0x6c] ss:$16 sps:$4 sm:$0xff]  }
  0x5f   : > { %v1292_v14 = vld [vmem:[%s1694_s14 + $0x60] ss:$16 sps:$4 sm:$0xff]   ;;  %v1293_v15 = vld [vmem:[%s1694_s14 + $0x68] ss:$16 sps:$4 sm:$0xff]   ;;  %v1294_v16 = vld [vmem:[%s1694_s14 + $0x84] ss:$16 sps:$4 sm:$0xff]  }
  0x60   : > { %530 = vmatpush1.bf16.msra.mxu0 %v1280_v6  ;;  %583 = vmatpush1.bf16.msra.mxu1 %v1281_v7  ;;  %v1296_v17 = vld [vmem:[%s1694_s14 + $0x8c] ss:$16 sps:$4 sm:$0xff]   ;;  %v1298_v18 = vld [vmem:[%s1694_s14 + $0x80] ss:$16 sps:$4 sm:$0xff]   ;;  %v1299_v19 = vld [vmem:[%s1694_s14 + $0x88] ss:$16 sps:$4 sm:$0xff]  }
  0x61   : > { %531 = vmatprep.subr.bf16.mxu0 %v1282_v8  ;;  %584 = vmatprep.subr.bf16.mxu1 %v1284_v9  ;;  %v1300_v20 = vld [vmem:[%s1694_s14 + $0xa4] ss:$16 sps:$4 sm:$0xff]   ;;  %v1302_v21 = vld [vmem:[%s1694_s14 + $0xac] ss:$16 sps:$4 sm:$0xff]   ;;  %v1304_v22 = vld [vmem:[%s1694_s14 + $0xa0] ss:$16 sps:$4 sm:$0xff]  }
  0x62   : > { %v1305_v23 = vld [vmem:[%s1694_s14 + $0xa8] ss:$16 sps:$4 sm:$0xff]   ;;  %v1306_v24 = vld [vmem:[%s1694_s14 + $0xc4] ss:$16 sps:$4 sm:$0xff]   ;;  %v1308_v25 = vld [vmem:[%s1694_s14 + $0xcc] ss:$16 sps:$4 sm:$0xff]  }
  0x63   : > { %v1310_v26 = vld [vmem:[%s1694_s14 + $0xc0] ss:$16 sps:$4 sm:$0xff]   ;;  %v1311_v27 = vld [vmem:[%s1694_s14 + $0xc8] ss:$16 sps:$4 sm:$0xff]   ;;  %v1312_v28 = vld [vmem:[%s1694_s14 + $0xe4] ss:$16 sps:$4 sm:$0xff]  }
  0x64   : > { %532 = vmatpush1.bf16.msra.mxu0 %v1286_v10  ;;  %585 = vmatpush1.bf16.msra.mxu1 %v1287_v11  ;;  %v1314_v29 = vld [vmem:[%s1694_s14 + $0xec] ss:$16 sps:$4 sm:$0xff]   ;;  %v1316_v30 = vld [vmem:[%s1694_s14 + $0xe0] ss:$16 sps:$4 sm:$0xff]   ;;  %v1317_v31 = vld [vmem:[%s1694_s14 + $0xe8] ss:$16 sps:$4 sm:$0xff]  }
  0x65   : > { %533 = vmatprep.subr.bf16.mxu0 %v1288_v12  ;;  %586 = vmatprep.subr.bf16.mxu1 %v1290_v13  ;;  %v1318_v32 = vld [vmem:[%s1694_s14 + $0x104] ss:$16 sps:$4 sm:$0xff]   ;;  %v1320_v33 = vld [vmem:[%s1694_s14 + $0x10c] ss:$16 sps:$4 sm:$0xff]   ;;  %v1322_v35 = vld [vmem:[%s1694_s14 + $0x100] ss:$16 sps:$4 sm:$0xff]  }
  0x66   : > { %v1338_v34 = vld [vmem:[#allocation3 + $0x4] ss:$8 sps:$4 sm:$0xff]   ;;  %v1323_v36 = vld [vmem:[%s1694_s14 + $0x108] ss:$16 sps:$4 sm:$0xff]   ;;  %v1328_v39 = vld [vmem:[%s1694_s14 + $0x120] ss:$16 sps:$4 sm:$0xff]  }
  0x67   : > { %v1324_v37 = vld [vmem:[%s1694_s14 + $0x124] ss:$16 sps:$4 sm:$0xff]   ;;  %v1326_v38 = vld [vmem:[%s1694_s14 + $0x12c] ss:$16 sps:$4 sm:$0xff]   ;;  %1168 = vmatprep.mubr.msk.bf16.mxu0 %vm520_vm0, %v1338_v34  ;;  %1170 = vmatprep.mubr.msk.bf16.mxu1 %vm520_vm0, %v1338_v34  ;;  %v1329_v40 = vld [vmem:[%s1694_s14 + $0x128] ss:$16 sps:$4 sm:$0xff]  }
  0x68   : > { %534 = vmatpush1.bf16.msra.mxu0 %v1292_v14  ;;  %587 = vmatpush1.bf16.msra.mxu1 %v1293_v15  ;;  %v1330_v41 = vld [vmem:[%s1694_s14 + $0x144] ss:$16 sps:$4 sm:$0xff]   ;;  %v1332_v42 = vld [vmem:[%s1694_s14 + $0x14c] ss:$16 sps:$4 sm:$0xff]   ;;  %v1334_v43 = vld [vmem:[%s1694_s14 + $0x140] ss:$16 sps:$4 sm:$0xff]  }
  0x69   : > { %535 = vmatprep.subr.bf16.mxu0 %v1294_v16  ;;  %588 = vmatprep.subr.bf16.mxu1 %v1296_v17  ;;  %v1335_v44 = vld [vmem:[%s1694_s14 + $0x148] ss:$16 sps:$4 sm:$0xff]   ;;  %v1339_v46 = vld [vmem:[#allocation3 + $0x14] ss:$8 sps:$4 sm:$0xff]   ;;  %v1510_v48 = vmov 0.0   ;;  %vm650_vm1 = vcmask 261120  }
  0x6a   : > { %v1336_v45 = vld [vmem:[#allocation3] ss:$8 sps:$4 sm:$0xff]   ;;  %v1341_v47 = vld [vmem:[#allocation3 + $0x10] ss:$8 sps:$4 sm:$0xff]   ;;  %s1511_s9 = smov 1   ;;  %s796_s26 = sld [smem:[#allocation2]] }
  0x6b   : > { %vm825_vm2 = vcmask 7168   ;;  %s1513_s30 = smov 126   ;;  %s1514_s10 = smov 125   ;;  %vm931_vm3 = vcmask 1031168   ;;  %vm1005_vm5 = vcmask 1022976  }
  0x6c   : > { %536 = vmatpush1.bf16.msra.mxu0 %v1298_v18  ;;  %589 = vmatpush1.bf16.msra.mxu1 %v1299_v19  ;;  %s1200_s15 = smul.u32 12, %s1690_s11  ;;  %s1015_s8 = scalar_lea.sflag [#allocation5], %s1690_s11 }
  0x6d   : > { %537 = vmatprep.subr.bf16.mxu0 %v1300_v20  ;;  %590 = vmatprep.subr.bf16.mxu1 %v1302_v21  ;;  %s1180_s6 = smul.u32 96, %s1568_s3  ;;  %s1515_s12 = smov [#allocation8]  }
  0x6e   : > { %s231_s16 = scalar_lea.vmem [#allocation8], %s1200_s15  ;;  %s1436_s13 = sshll.u32 %s1515_s12, 4  ;;  %s1437_s13 = int_to_ptr.vmem [resolvable:$false] %s1436_s13 }
  0x6f   : > { %s1028_s5 = sshll.u32 %s231_s16, 4  ;;  %s1772_s27 = scalar_lea.hbm %s1824_s4, %s1180_s6  ;;  %s1763_s5 = int_to_ptr.vmem [resolvable:$true] %s1028_s5 }
  0x70   : > { %538 = vmatpush1.bf16.msra.mxu0 %v1304_v22  ;;  %591 = vmatpush1.bf16.msra.mxu1 %v1305_v23  ;;  %s1432_s29 = scalar_lea.vmem %s1763_s5, 192  ;;  %s1438_s14 = scalar_lea.vmem %s1437_s13, 384 }
  0x71   : > { %539 = vmatprep.subr.bf16.mxu0 %v1306_v24  ;;  %592 = vmatprep.subr.bf16.mxu1 %v1308_v25  ;;  %v649_v25 = vld [vmem:[%s1822_s2] sm:$0x3f]  ;;  %p1433_p4 = scmp.ne.s32.totalorder %s1763_s5, %s1432_s29  ;;  %p1439_p10 = scmp.lt.s32.totalorder %s1763_s5, %s1437_s13 }
  0x72   : > { %p1440_p13 = scmp.lt.s32.totalorder %s1438_s14, %s1432_s29 }
  0x73   : > { %p1434_p6 = pnand %p1433_p4, %p1638_p12 }
  0x74   : > { %540 = vmatpush1.bf16.msra.mxu0 %v1310_v26  ;;  %593 = vmatpush1.bf16.msra.mxu1 %v1311_v27  ;;  %p1441_p3 = por %p1440_p13, %p1439_p10 }
  0x75   : > { %541 = vmatprep.subr.bf16.mxu0 %v1312_v28  ;;  %594 = vmatprep.subr.bf16.mxu1 %v1314_v29  ;;  %p1435_p8 = pneg %p1434_p6 }
  0x77   : > { %p1442_p7 = pnand %p1441_p3, %p1435_p8 }
  0x78   : > { %542 = vmatpush1.bf16.msra.mxu0 %v1316_v30  ;;  %595 = vmatpush1.bf16.msra.mxu1 %v1317_v31 }
  0x79   : > { %543 = vmatprep.subr.bf16.mxu0 %v1318_v32  ;;  %596 = vmatprep.subr.bf16.mxu1 %v1320_v33 }
  0x7c   : > { %544 = vmatpush1.bf16.msra.mxu0 %v1322_v35  ;;  %597 = vmatpush1.bf16.msra.mxu1 %v1323_v36 }
  0x7d   : > { %545 = vmatprep.subr.bf16.mxu0 %v1324_v37  ;;  %598 = vmatprep.subr.bf16.mxu1 %v1326_v38 }
  0x80   : > { %546 = vmatpush1.bf16.msra.mxu0 %v1328_v39  ;;  %599 = vmatpush1.bf16.msra.mxu1 %v1329_v40 }
  0x81   : > { %547 = vmatprep.subr.bf16.mxu0 %v1330_v41  ;;  %600 = vmatprep.subr.bf16.mxu1 %v1332_v42 }
  0x84   : > { %548 = vmatpush1.bf16.msra.mxu0 %v1334_v43  ;;  %601 = vmatpush1.bf16.msra.mxu1 %v1335_v44 }
  0x87   : > { %560 = vmatmul.mubr.bf16.vlgmr.msra.gmra.mrb[0].mxu0 %v1336_v45  ;;  %613 = vmatmul.mubr.bf16.vlgmr.msra.gmra.mrb[0].mxu1 %v1336_v45 }
  0x88   : > { %1169 = vmatprep.mubr.msk.bf16.mxu0 %vm520_vm0, %v1339_v46  ;;  %1171 = vmatprep.mubr.msk.bf16.mxu1 %vm520_vm0, %v1339_v46  ;;  %v837_v46 = vstv %s796_s26 }
  0x8f   : > { %570 = vmatmul.mubr.bf16.gmra.mrb[4].mxu0 %v1341_v47  ;;  %623 = vmatmul.mubr.bf16.gmra.mrb[4].mxu1 %v1341_v47 }
  0x90   : > { %718 = vmatprep.mubr.f32.mxu0 %v1510_v48  ;;  %789 = vmatprep.mubr.f32.mxu1 %v1510_v48 }
 0x15a   : > { %v561_v49 = vpop.f32.mrb[0].mxu0  ;;  %v614_v50 = vpop.f32.mrb[0].mxu1 }
 0x15b   : > { %v563_v51 = vpop.f32.mrb[1].mxu0  ;;  %v616_v52 = vpop.f32.mrb[1].mxu1  ;;  %v633_v55 = vmax.f32 %v561_v49, 0.0  ;;  %v635_v56 = vmax.f32 %v614_v50, 0.0 }
 0x15c   : > { %v565_v53 = vpop.f32.mrb[2].mxu0  ;;  %v618_v54 = vpop.f32.mrb[2].mxu1  ;;  %v634_v61 = vmax.f32 %v563_v51, 0.0  ;;  %v636_v62 = vmax.f32 %v616_v52, 0.0 }
 0x15d   : > { %v637_v57 = vmax.f32 %v565_v53, 0.0  ;;  %v639_v58 = vmax.f32 %v618_v54, 0.0  ;;  %v567_v59 = vpop.f32.mrb[3].mxu0  ;;  %v620_v60 = vpop.f32.mrb[3].mxu1 }
 0x15e   : > { %v638_v63 = vmax.f32 %v567_v59, 0.0  ;;  %v640_v0 = vmax.f32 %v620_v60, 0.0 }
 0x15f   : > { %v1183_v1 = vpack.c.bf16 %v637_v57, %v633_v55  ;;  %v1191_v2 = vpack.c.bf16 %v639_v58, %v635_v56 }
 0x160   : > { %v1181_v3 = vpack.c.bf16 %v638_v63, %v634_v61  ;;  %v1189_v4 = vpack.c.bf16 %v640_v0, %v636_v62 }
 0x162   : > { %v571_v5 = vpop.f32.mrb[4].mxu0  ;;  %v624_v6 = vpop.f32.mrb[4].mxu1  ;;  %1182 = vmatprep.subr.bf16.mxu0 %v1181_v3  ;;  %1190 = vmatprep.subr.bf16.mxu1 %v1189_v4 }
 0x163   : > { %v573_v7 = vpop.f32.mrb[5].mxu0  ;;  %v626_v8 = vpop.f32.mrb[5].mxu1  ;;  %1184 = vmatpush1.bf16.msra.mxu0 %v1183_v1  ;;  %1192 = vmatpush1.bf16.msra.mxu1 %v1191_v2  ;;  %v641_v11 = vmax.f32 %v571_v5, 0.0  ;;  %v643_v12 = vmax.f32 %v624_v6, 0.0 }
 0x164   : > { %v575_v9 = vpop.f32.mrb[6].mxu0  ;;  %v628_v10 = vpop.f32.mrb[6].mxu1  ;;  %v642_v17 = vmax.f32 %v573_v7, 0.0  ;;  %v644_v18 = vmax.f32 %v626_v8, 0.0 }
 0x165   : > { %v645_v13 = vmax.f32 %v575_v9, 0.0  ;;  %v647_v14 = vmax.f32 %v628_v10, 0.0  ;;  %v577_v15 = vpop.f32.mrb[7].mxu0  ;;  %v630_v16 = vpop.f32.mrb[7].mxu1 }
 0x166   : > { %v646_v19 = vmax.f32 %v577_v15, 0.0  ;;  %v648_v20 = vmax.f32 %v630_v16, 0.0 }
 0x167   : > { %v1187_v21 = vpack.c.bf16 %v645_v13, %v641_v11  ;;  %v1195_v22 = vpack.c.bf16 %v647_v14, %v643_v12 }
 0x168   : > { %v1185_v23 = vpack.c.bf16 %v646_v19, %v642_v17  ;;  %v1193_v24 = vpack.c.bf16 %v648_v20, %v644_v18 }
 0x16a   : > { %1186 = vmatprep.subr.bf16.mxu0 %v1185_v23  ;;  %1194 = vmatprep.subr.bf16.mxu1 %v1193_v24 }
 0x16b   : > { %1188 = vmatpush1.bf16.msra.mxu0 %v1187_v21  ;;  %1196 = vmatpush1.bf16.msra.mxu1 %v1195_v22 }
 0x16e   : > { %1172 = vmatmul.mubr.msk.f32.vlgmr.msra.gmra.mrb[8].mxu0 %vm650_vm1, %v649_v25  ;;  %1173 = vmatmul.mubr.msk.f32.vlgmr.msra.gmra.mrb[8].mxu1 %vm650_vm1, %v649_v25 }
 0x241   : > { %v720_v26 = vpop.f32.mrb[8].mxu0  ;;  %v791_v27 = vpop.f32.mrb[8].mxu1 }
 0x242   : > { %v803_v28 = vrot.slane %v791_v27, 2  ;;  %v793_v29 = vpop.f32.mrb[9].mxu1  ;;  %v801_v30 = vrot.slane %v720_v26, 2  ;;  %v722_v31 = vpop.f32.mrb[9].mxu0  ;;  %v813_v38 = vrot.slane %v720_v26, 4  ;;  %v815_v41 = vrot.slane %v791_v27, 4 }
 0x243   : > { %v804_v32 = vrot.slane %v793_v29, 2  ;;  %v802_v33 = vrot.slane %v722_v31, 2  ;;  %v814_v39 = vrot.slane %v722_v31, 4  ;;  %v816_v40 = vrot.slane %v793_v29, 4 }
 0x244   : > { %846 = vrot.lane.b32.xlu1 %v803_v28, %s1511_s9  ;;  %v811_v34 = vadd.f32 %v803_v28, %v791_v27  ;;  %842 = vrot.lane.b32.xlu0 %v801_v30, %s1511_s9  ;;  %v809_v35 = vadd.f32 %v801_v30, %v720_v26 }
 0x245   : > { %v812_v36 = vadd.f32 %v804_v32, %v793_v29  ;;  %v810_v37 = vadd.f32 %v802_v33, %v722_v31 }
 0x248   : > { %848 = vrot.lane.b32.xlu1 %v804_v32, %s1511_s9  ;;  %817 = vrot.lane.b32.xlu0 %v813_v38, %s1511_s9 }
 0x24c   : > { %819 = vrot.lane.b32.xlu1 %v814_v39, %s1511_s9  ;;  %844 = vrot.lane.b32.xlu0 %v802_v33, %s1511_s9 }
 0x250   : > { %823 = vrot.lane.b32.xlu1 %v816_v40, %s1511_s9  ;;  %821 = vrot.lane.b32.xlu0 %v815_v41, %s1511_s9 }
 0x2b6   : > { %v847_v42 = vpop.permute.xlu1 %846  ;;  %v843_v43 = vpop.permute.xlu0 %842 }
 0x2b7   : > { %v857_v44 = vadd.f32 %v843_v43, %v720_v26 }
 0x2ba   : > { %v849_v45 = vpop.permute.xlu1 %848  ;;  %v818_v47 = vpop.permute.xlu0 %817 }
 0x2bb   : > { %v833_v48 = vadd.f32 %v818_v47, %v809_v35  ;;  %v861_v49 = vadd.f32 %v857_v44, %v818_v47  ;;  %v852_v52 = vsel %vm825_vm2, %v847_v42, %v849_v45  ;;  %v1512_v45 = vmov 1966171168  }
 0x2bc   : > { %v860_v0 = vadd.f32 %v852_v52, %v793_v29 }
 0x2bd   : > { %v838_v50 = vadd.f32 %v837_v46, %v833_v48  ;;  %v865_v51 = vadd.f32 %v861_v49, %v837_v46 }
 0x2be   : > { %v820_v53 = vpop.permute.xlu1 %819  ;;  %v845_v54 = vpop.permute.xlu0 %844 }
 0x2bf   : > { %v869_v55 = vsub.f32 0.0, %v838_v50  ;;  %v943_v56 = vsub.f32 0.0, %v865_v51  ;;  %v826_v57 = vsel %vm825_vm2, %v818_v47, %v820_v53  ;;  %v850_v58 = vsel %vm825_vm2, %v843_v43, %v845_v54 }
 0x2c0   : > { %v834_v59 = vadd.f32 %v826_v57, %v810_v37  ;;  %v851_v60 = vsel %vm825_vm2, %v845_v54, %v847_v42  ;;  %v858_v61 = vadd.f32 %v850_v58, %v722_v31  ;;  %v898_v47 = vlaneseq }
 0x2c1   : > { %v873_v62 = vmul.f32 1.442695, %v869_v55  ;;  %v947_v63 = vmul.f32 1.442695, %v943_v56  ;;  %v859_v5 = vadd.f32 %v851_v60, %v791_v27 }
 0x2c2   : > { %v839_v1 = vadd.f32 %v837_v46, %v834_v59  ;;  %v862_v2 = vadd.f32 %v858_v61, %v826_v57  ;;  %v824_v3 = vpop.permute.xlu1 %823  ;;  %v822_v4 = vpop.permute.xlu0 %821  ;;  %v899_v51 = vshrl.u32 %v898_v47, 7  ;;  %vm1758_vm4 = vcmp.lt.s32.totalorder %v898_v47, 384 }
 0x2c3   : > { %1342 = vpow2.f32 %v873_v62  ;;  %v827_v6 = vsel %vm825_vm2, %v820_v53, %v822_v4  ;;  %v828_v7 = vsel %vm825_vm2, %v822_v4, %v824_v3 }
 0x2c4   : > { %v870_v8 = vsub.f32 0.0, %v839_v1  ;;  %v866_v9 = vadd.f32 %v862_v2, %v837_v46  ;;  %v835_v10 = vadd.f32 %v827_v6, %v811_v34  ;;  %1344 = vpow2.f32 %v947_v63 }
 0x2c5   : > { %v836_v11 = vadd.f32 %v828_v7, %v812_v36  ;;  %v863_v12 = vadd.f32 %v859_v5, %v827_v6  ;;  %v864_v13 = vadd.f32 %v860_v0, %v828_v7 }
 0x2c6   : > { %v875_v14 = vmul.f32 1.442695, %v870_v8  ;;  %v944_v15 = vsub.f32 0.0, %v866_v9  ;;  %v840_v16 = vadd.f32 %v837_v46, %v835_v10 }
 0x2c7   : > { %v841_v17 = vadd.f32 %v837_v46, %v836_v11  ;;  %v867_v18 = vadd.f32 %v863_v12, %v837_v46  ;;  %v868_v19 = vadd.f32 %v864_v13, %v837_v46  ;;  %v896_v46 = vunpack.c.l.s4 %v1512_v45 }
 0x2c8   : > { %1346 = vpow2.f32 %v875_v14  ;;  %v949_v20 = vmul.f32 1.442695, %v944_v15  ;;  %v871_v21 = vsub.f32 0.0, %v840_v16 }
 0x2c9   : > { %v872_v22 = vsub.f32 0.0, %v841_v17  ;;  %v945_v23 = vsub.f32 0.0, %v867_v18  ;;  %v946_v24 = vsub.f32 0.0, %v868_v19  ;;  %v897_v50 = vunpack.c.0.s8 %v896_v46 }
 0x2ca   : > { %1348 = vpow2.f32 %v949_v20  ;;  %v877_v25 = vmul.f32 1.442695, %v871_v21 }
 0x2cb   : > { %v879_v26 = vmul.f32 1.442695, %v872_v22  ;;  %v951_v27 = vmul.f32 1.442695, %v945_v23  ;;  %v953_v28 = vmul.f32 1.442695, %v946_v24  ;;  %v900_v57 = vsub.s32 %v897_v50, %v899_v51 }
 0x2cc   : > { %1350 = vpow2.f32 %v877_v25 }
 0x2cd   : > { %v1343_v29 = vpop.eup %1342  ;;  %1352 = vpow2.f32 %v879_v26 }
 0x2ce   : > { %1354 = vpow2.f32 %v951_v27  ;;  %v1345_v30 = vpop.eup %1344  ;;  %v881_v31 = vadd.f32 1.0, %v1343_v29 }
 0x2cf   : > { %1356 = vpow2.f32 %v953_v28  ;;  %v955_v33 = vadd.f32 1.0, %v1345_v30 }
 0x2d0   : > { %1358 = vrcp.f32 %v881_v31 }
 0x2d2   : > { %v1347_v32 = vpop.eup %1346 }
 0x2d3   : > { %v882_v34 = vadd.f32 1.0, %v1347_v32 }
 0x2d4   : > { %v1349_v35 = vpop.eup %1348 }
 0x2d5   : > { %1360 = vrcp.f32 %v882_v34  ;;  %v956_v36 = vadd.f32 1.0, %v1349_v35 }
 0x2d6   : > { %v1351_v37 = vpop.eup %1350  ;;  %1362 = vrcp.f32 %v955_v33 }
 0x2d7   : > { %v1353_v38 = vpop.eup %1352  ;;  %1364 = vrcp.f32 %v956_v36  ;;  %v883_v39 = vadd.f32 1.0, %v1351_v37 }
 0x2d8   : > { %v1355_v40 = vpop.eup %1354  ;;  %v884_v41 = vadd.f32 1.0, %v1353_v38 }
 0x2d9   : > { %v1357_v42 = vpop.eup %1356  ;;  %1366 = vrcp.f32 %v883_v39  ;;  %v957_v43 = vadd.f32 1.0, %v1355_v40 }
 0x2da   : > { %1368 = vrcp.f32 %v884_v41  ;;  %v958_v44 = vadd.f32 1.0, %v1357_v42  ;;  %v1359_v48 = vpop.eup %1358 }
 0x2db   : > { %1370 = vrcp.f32 %v957_v43 }
 0x2dc   : > { %1372 = vrcp.f32 %v958_v44 }
 0x2df   : > { %v1361_v49 = vpop.eup %1360 }
 0x2e0   : > { %v1363_v52 = vpop.eup %1362  ;;  %v893_v53 = vcombine.low %v1359_v48, %v1361_v49 }
 0x2e1   : > { %v1365_v54 = vpop.eup %1364 }
 0x2e2   : > { %v967_v55 = vcombine.low %v1363_v52, %v1365_v54  ;;  %v901_v62 = vrot.slane %v893_v53, %v900_v57 }
 0x2e3   : > { %v1367_v56 = vpop.eup %1366 }
 0x2e4   : > { %v1369_v58 = vpop.eup %1368  ;;  %v975_v3 = vrot.slane %v967_v55, %v900_v57 }
 0x2e5   : > { %v1371_v59 = vpop.eup %1370  ;;  %v894_v60 = vcombine.low %v1367_v56, %v1369_v58 }
 0x2e6   : > { %v1373_v61 = vpop.eup %1372 }
 0x2e7   : > { %v908_v63 = vrot.slane %v894_v60, %v900_v57  ;;  %v968_v0 = vcombine.low %v1371_v59, %v1373_v61 }
 0x2e9   : > { %v910_v1 = vcombine.high %v901_v62, %v908_v63  ;;  %v909_v2 = vcombine.low %v901_v62, %v908_v63  ;;  %v982_v4 = vrot.slane %v968_v0, %v900_v57 }
 0x2eb   : > { %v924_v5 = vrot.slane %v910_v1, %v900_v57  ;;  %v917_v6 = vrot.slane %v909_v2, %v900_v57  ;;  %v984_v7 = vcombine.high %v975_v3, %v982_v4  ;;  %v983_v8 = vcombine.low %v975_v3, %v982_v4 }
 0x2ed   : > { %927 = vrot.lane.b32.xlu1 %v924_v5, %s1513_s30  ;;  %925 = vrot.lane.b32.xlu0 %v917_v6, %s1513_s30  ;;  %v998_v9 = vrot.slane %v984_v7, %v900_v57  ;;  %v991_v10 = vrot.slane %v983_v8, %v900_v57 }
 0x2f1   : > { %1001 = vrot.lane.b32.xlu1 %v998_v9, %s1514_s10  ;;  %999 = vrot.lane.b32.xlu0 %v991_v10, %s1514_s10 }
 0x35f   : > { %v928_v11 = vpop.permute.xlu1 %927  ;;  %v926_v12 = vpop.permute.xlu0 %925 }
 0x360   : > { %v930_v14 = vrot.slane %v928_v11, 1  ;;  %v929_v15 = vrot.slane %v926_v12, 1 }
 0x362   : > { %v933_v16 = vsel %vm931_vm3, %v928_v11, %v930_v14  ;;  %v932_v17 = vsel %vm931_vm3, %v926_v12, %v929_v15 }
 0x363   : > { %1174 = vst.msk [vmem:[%s231_s16 + $0x6] ss:$2 sm:$0x7] %vm1758_vm4, %v933_v16  ;;  %940 = vst.msk [vmem:[%s231_s16] ss:$2 sm:$0x7] %vm1758_vm4, %v932_v17  ;;  %v1002_v18 = vpop.permute.xlu1 %1001  ;;  %v1000_v19 = vpop.permute.xlu0 %999 }
 0x364   : > { %v1004_v20 = vrot.slane %v1002_v18, 1  ;;  %v1003_v21 = vrot.slane %v1000_v19, 1 }
 0x366   : > { %v1007_v22 = vsel %vm1005_vm5, %v1002_v18, %v1004_v20  ;;  %v1006_v23 = vsel %vm1005_vm5, %v1000_v19, %v1003_v21 }
 0x367   : > { %1176 = vst.msk [vmem:[%s231_s16 + $0x7] ss:$2 sm:$0x7] %vm1758_vm4, %v1007_v22  ;;  %1175 = vst.msk [vmem:[%s231_s16 + $0x1] ss:$2 sm:$0x7] %vm1758_vm4, %v1006_v23 }
 0x368   : > { %1445 = shalt.err (!%p1442_p7)
}
 0x369   : > { %s1446_s22 = scalar_lea.hbm %s1772_s27, 192  ;;  %s1450_s26 = scalar_lea.hbm %s1824_s4, 384 }
 0x36a   : > { %p1447_p9 = scmp.ne.s32.totalorder %s1772_s27, %s1446_s22  ;;  %p1451_p5 = scmp.lt.u32.totalorder %s1772_s27, %s1824_s4 }
 0x36b   : > { %p1452_p1 = scmp.lt.u32.totalorder %s1450_s26, %s1446_s22  ;;  %p1454_p4 = scmp.lt.u32.totalorder %s1446_s22, %s1772_s27 }
 0x36c   : > { %p1448_p2 = pnand %p1447_p9, %p1638_p12 }
 0x36d   : > { %p1453_p11 = por %p1452_p1, %p1451_p5 }
 0x36e   : > { %p1449_p0 = pneg %p1448_p2 }
 0x36f   : > { %p1455_p6 = por %p1454_p4, %p1453_p11 }
 0x371   : > { %p1456_p8 = pnand %p1455_p6, %p1449_p0 }
 0x373   : > { %1459 = shalt.err (!%p1456_p8)
}
 0x374   : > { %s1516_s15 = smov 96   ;;  %s1517_s16 = smov 192  }
 0x375   : > { %s1518_s6 = smov 6  }
 0x376   : > { %1207 = dma.vmem_to_hbm [thread:$0]  (%p1638_p12), %s1763_s5, 192, %s1772_s27, %s1015_s8, %s1516_s15, %s1517_s16, %s1518_s6  }
 0x377 PF: > { %s1043_s3 = sand.u32 1, %s1490_s17   ;;  %p1841_p10 = scmp.ne.s32.totalorder %s1829_s23, 0 }
 0x378   : > { %p1842_p13 = scmp.ge.s32.totalorder %s1502_s20, 2  ;;  %s1044_s7 = scalar_lea.sflag [#allocation5], %s1043_s3 }
 0x37a   : > { %p1218_p3 = pnand %p1842_p13, %p1841_p10 }
 0x37c   : > { %1485 = dma.done.wait (!%p1218_p3), %s1044_s7, 192  }
 0x37d   : > { %1487 = vsyncadd (!%p1218_p3), %s1044_s7, 4294967104  ;;  %p19_p7 = scmp.ge.s32.totalorder %s1603_s28, 4   ;;  %s1843_s17 = smov %s1494_s18 }
 0x37e   : > { %s1844_s18 = smov %s1498_s19  ;;  %s1845_s19 = smov %s1634_s21 }
 0x37f   : > { %s1846_s20 = smov %s1603_s28  ;;  %21 = sbr.rel (!%p19_p7) target bundleno = 8 (0x8), region = 89 }
 0x386   :  { %1049 = vsyncpa [#allocation4], 1 }
 0x387   :  { %1051 = vsyncpa [#allocation4 + $0x1], 1 }
 0x388   :  { %1052 = vsyncpa [#allocation7], 1 }
 0x389   :  { %1054 = vsyncpa [#allocation7 + $0x1], 1 }
 0x38a   :  { %1055 = vsyncpa [#allocation5], 1 }
 0x38b   :  { %1057 = vsyncpa [#allocation5 + $0x1], 1 }

</bundles_post_ra>
